<compile_context>
chip_gen: v5e
topology: v5e:2x2
jax: 0.10.0
libtpu: 0.0.40
codegen_flags: <defaults>
</compile_context>

<pallas_src>
import functools

import jax
import jax.numpy as jnp
from jax import lax
from jax.experimental import pallas as pl
from jax.experimental.pallas import tpu as pltpu


def _round_up(x, m):
    return ((x + m - 1) // m) * m


def _cdiv(a, b):
    return (a + b - 1) // b


# --------------------------------------------------------------------------
# Kernel 1: weight-resident mode. grid = (num_row_tiles,). W1/W2/biases use
# constant index_maps -> DMAed once, resident across all row tiles.
# --------------------------------------------------------------------------
def _ffn_kernel_resident(x_ref, w1_ref, b1_ref, w2_ref, b2_ref, gamma_ref,
                         beta_ref, o_ref, *, eps, inv_d):
    x = x_ref[...].astype(jnp.float32)
    # LayerNorm via sums with the true-D divisor (exact under zero-padded D cols;
    # padded gamma/beta are zero so padded xn columns are exactly zero).
    mean = jnp.sum(x, axis=-1, keepdims=True) * inv_d
    ex2 = jnp.sum(x * x, axis=-1, keepdims=True) * inv_d
    var = ex2 - mean * mean
    xn = (x - mean) * lax.rsqrt(var + eps)
    xn = xn * gamma_ref[...].astype(jnp.float32) + beta_ref[...].astype(jnp.float32)

    # MXU matmuls in the storage dtype of the weights (bf16 path by default),
    # f32 accumulation.
    h = jnp.dot(xn.astype(w1_ref.dtype), w1_ref[...],
                preferred_element_type=jnp.float32)
    h = h + b1_ref[...].astype(jnp.float32)
    # exact erf GELU (torch.nn.functional.gelu default), f32 math
    h = h * 0.5 * (1.0 + lax.erf(h * 0.7071067811865476))
    y = jnp.dot(h.astype(w2_ref.dtype), w2_ref[...],
                preferred_element_type=jnp.float32)

    # TODO(synk): nn.Dropout(0.1) is identity in eval mode; training-mode RNG
    # masking (pltpu.prng_seed / prng_random_bits) intentionally omitted.
    y = y + b2_ref[...].astype(jnp.float32) + x
    o_ref[...] = y.astype(o_ref.dtype)


# --------------------------------------------------------------------------
# Kernel 2: k-tiled mode. grid = (num_row_tiles, num_hidden_chunks).
# LayerNorm cached once per row tile; f32 accumulator over hidden chunks.
# --------------------------------------------------------------------------
def _ffn_kernel_ktiled(x_ref, w1_ref, b1_ref, w2_ref, b2_ref, gamma_ref,
                       beta_ref, o_ref, xn_ref, acc_ref, *, eps, inv_d):
    k = pl.program_id(1)
    nk = pl.num_programs(1)

    @pl.when(k == 0)
    def _():
        x = x_ref[...].astype(jnp.float32)
        mean = jnp.sum(x, axis=-1, keepdims=True) * inv_d
        ex2 = jnp.sum(x * x, axis=-1, keepdims=True) * inv_d
        var = ex2 - mean * mean
        xn = (x - mean) * lax.rsqrt(var + eps)
        xn = xn * gamma_ref[...].astype(jnp.float32) + beta_ref[...].astype(jnp.float32)
        xn_ref[...] = xn.astype(xn_ref.dtype)   # MXU input dtype (bf16 path)
        acc_ref[...] = jnp.zeros_like(acc_ref)

    # Hidden chunk k: (tm, D) @ (D, th) -> gelu -> (tm, th) @ (th, D)
    h = jnp.dot(xn_ref[...], w1_ref[...], preferred_element_type=jnp.float32)
    h = h + b1_ref[...].astype(jnp.float32)
    h = h * 0.5 * (1.0 + lax.erf(h * 0.7071067811865476))
    acc_ref[...] += jnp.dot(h.astype(w2_ref.dtype), w2_ref[...],
                            preferred_element_type=jnp.float32)

    @pl.when(k == nk - 1)
    def _():
        # TODO(synk): dropout is identity in eval mode.
        y = acc_ref[...] + b2_ref[...].astype(jnp.float32) + x_ref[...].astype(jnp.float32)
        o_ref[...] = y.astype(o_ref.dtype)


def position_wise_feed_forward(x, w1, b1, w2, b2, gamma, beta, *, eps=1e-6,
                               use_bf16_mxu=True, tile_m=None, tile_h=None):
    """x: (B, S, dim_in). w1: (dim_in, dim_hid), w2: (dim_hid, dim_in).

    Weights are stored transposed vs torch.nn.Linear (i.e. (in, out)) so the
    kernel does a plain `x @ W`. Eval-mode (dropout = identity).
    """
    B, S, D = x.shape
    H = w1.shape[1]
    N = B * S

    # --- generation-aware VMEM budget -------------------------------------
    try:
        vmem_cap = int(pltpu.get_tpu_info().vmem_capacity_bytes)
    except Exception:
        vmem_cap = 128 * 1024 * 1024
    vmem_limit = int(vmem_cap * 0.8)          # ~102 MiB v5e/v6e, ~51 MiB v7x
    big_vmem = vmem_cap >= 96 * 1024 * 1024

    # --- MXU compute dtype (bf16 path by default) --------------------------
    if use_bf16_mxu and jnp.dtype(w1.dtype) == jnp.float32:
        mxu_dtype = jnp.bfloat16
    else:
        mxu_dtype = w1.dtype
    w1 = w1.astype(mxu_dtype)
    w2 = w2.astype(mxu_dtype)
    itemsize_w = jnp.dtype(mxu_dtype).itemsize
    itemsize_x = jnp.dtype(x.dtype).itemsize

    # --- tile sizing --------------------------------------------------------
    packing = 8 * max(1, 4 // itemsize_x)      # sublane packing of I/O dtype
    base_tm = tile_m if tile_m is not None else (512 if big_vmem else 256)
    tm = max(packing, min(base_tm, _round_up(N, packing)))
    tm = _round_up(tm, packing)

    Dp = _round_up(D, 128)                    # lane-dense output width
    Hp_full = _round_up(H, 128)

    def _bytes_resident(tm_):
        w = 2 * 2 * Dp * Hp_full * itemsize_w          # W1+W2 (double-buffered)
        io = 2 * (2 * tm_ * Dp * itemsize_x)           # x + out tiles
        tmp = tm_ * Hp_full * 4 + 2 * tm_ * Dp * 4     # h (f32) + xn/y temporaries
        return w + io + tmp + (4 << 20)

    resident = _bytes_resident(tm) <= vmem_limit

    if resident:
        th = Hp_full
        Hp = Hp_full
        # Ensure >= 2 row tiles so the "parallel" axis feeds both v7x TCs
        # (cheap here: weights are resident, extra m steps add no weight traffic).
        if _cdiv(N, tm) < 2 and N > packing:
            tm = max(packing, _round_up(_cdiv(N, 2), packing))
    else:
        base_th = tile_h if tile_h is not None else (1024 if big_vmem else 256)
        th = max(128, min(_round_up(base_th, 128), Hp_full))

        def _bytes_ktiled(tm_, th_):
            w = 2 * 2 * Dp * th_ * itemsize_w          # W1/W2 chunks (double-buffered)
            io = 2 * (2 * tm_ * Dp * itemsize_x)       # x + out tiles
            scratch = tm_ * Dp * itemsize_w + tm_ * Dp * 4   # xn cache + f32 acc
            tmp = 2 * tm_ * th_ * 4                    # h temporaries
            return w + io + scratch + tmp + (4 << 20)

        while th > 128 and _bytes_ktiled(tm, th) > vmem_limit:
            th = max(128, _round_up(th // 2, 128))
        Hp = _round_up(H, th)

    Np = _round_up(N, tm)

    # --- zero padding (exact) ----------------------------------------------
    x2 = x.reshape(N, D)
    if Dp != D:
        x2 = jnp.pad(x2, ((0, 0), (0, Dp - D)))
        w1 = jnp.pad(w1, ((0, Dp - D), (0, 0)))
        w2 = jnp.pad(w2, ((0, 0), (0, Dp - D)))
        b2 = jnp.pad(b2, ((0, Dp - D),))
        gamma = jnp.pad(gamma, ((0, Dp - D),))
        beta = jnp.pad(beta, ((0, Dp - D),))
    if Np != N:
        x2 = jnp.pad(x2, ((0, Np - N), (0, 0)))
    if Hp != H:
        w1 = jnp.pad(w1, ((0, 0), (0, Hp - H)))
        b1 = jnp.pad(b1, ((0, Hp - H),))
        w2 = jnp.pad(w2, ((0, Hp - H), (0, 0)))

    b1_2 = b1.reshape(1, Hp)
    b2_2 = b2.reshape(1, Dp)
    gamma_2 = gamma.reshape(1, Dp)
    beta_2 = beta.reshape(1, Dp)

    # --- cost estimate (advisory) -------------------------------------------
    cost = pl.CostEstimate(
        flops=4 * N * D * H,
        transcendentals=N * H,
        bytes_accessed=(2 * N * D * itemsize_x
                        + 2 * D * H * itemsize_w
                        + (2 * D + H) * 4),
    )

    inv_d = 1.0 / float(D)

    if resident:
        kernel = functools.partial(_ffn_kernel_resident, eps=eps, inv_d=inv_d)
        grid = (Np // tm,)
        in_specs = [
            pl.BlockSpec((tm, Dp), lambda i: (i, 0)),   # x rows
            pl.BlockSpec((Dp, Hp), lambda i: (0, 0)),   # W1 (resident)
            pl.BlockSpec((1, Hp), lambda i: (0, 0)),    # b1
            pl.BlockSpec((Hp, Dp), lambda i: (0, 0)),   # W2 (resident)
            pl.BlockSpec((1, Dp), lambda i: (0, 0)),    # b2
            pl.BlockSpec((1, Dp), lambda i: (0, 0)),    # gamma
            pl.BlockSpec((1, Dp), lambda i: (0, 0)),    # beta
        ]
        out_specs = pl.BlockSpec((tm, Dp), lambda i: (i, 0))
        scratch_shapes = []
        dims = ("parallel",)
    else:
        kernel = functools.partial(_ffn_kernel_ktiled, eps=eps, inv_d=inv_d)
        grid = (Np // tm, Hp // th)
        in_specs = [
            pl.BlockSpec((tm, Dp), lambda i, k: (i, 0)),   # x rows (resident over k)
            pl.BlockSpec((Dp, th), lambda i, k: (0, k)),   # W1 hidden-chunk
            pl.BlockSpec((1, th), lambda i, k: (0, k)),    # b1 hidden-chunk
            pl.BlockSpec((th, Dp), lambda i, k: (k, 0)),   # W2 hidden-chunk
            pl.BlockSpec((1, Dp), lambda i, k: (0, 0)),    # b2
            pl.BlockSpec((1, Dp), lambda i, k: (0, 0)),    # gamma
            pl.BlockSpec((1, Dp), lambda i, k: (0, 0)),    # beta
        ]
        out_specs = pl.BlockSpec((tm, Dp), lambda i, k: (i, 0))
        scratch_shapes = [
            pltpu.VMEM((tm, Dp), mxu_dtype),   # cached LayerNorm(x) in MXU dtype
            pltpu.VMEM((tm, Dp), jnp.float32), # f32 accumulator over hidden chunks
        ]
        dims = ("parallel", "arbitrary")

    out = pl.pallas_call(
        kernel,
        out_shape=jax.ShapeDtypeStruct((Np, Dp), x.dtype),
        grid_spec=pltpu.PrefetchScalarGridSpec(
            num_scalar_prefetch=0,
            grid=grid,
            in_specs=in_specs,
            out_specs=out_specs,
            scratch_shapes=scratch_shapes,
        ),
        compiler_params=pltpu.CompilerParams(
            dimension_semantics=dims,
            vmem_limit_bytes=vmem_limit,
        ),
        cost_estimate=cost,
    )(x2, w1, b1_2, w2, b2_2, gamma_2, beta_2)

    out = out[:N, :D]
    return out.reshape(B, S, D)


if __name__ == "__main__":
    # Small, deterministic, lane-aligned shapes consistent with the module.
    B, S = 2, 8               # batch, sequence
    DIM_IN, DIM_HID = 128, 256

    key = jax.random.PRNGKey(0)
    k_x, k_w1, k_b1, k_w2, k_b2 = jax.random.split(key, 5)

    x = jax.random.normal(k_x, (B, S, DIM_IN), dtype=jnp.float32)

    # nn.Linear-style init (uniform in +/- 1/sqrt(fan_in)); weights stored as (in, out).
    lim1 = 1.0 / jnp.sqrt(DIM_IN)
    lim2 = 1.0 / jnp.sqrt(DIM_HID)
    w1 = jax.random.uniform(k_w1, (DIM_IN, DIM_HID), jnp.float32, -lim1, lim1)
    b1 = jax.random.uniform(k_b1, (DIM_HID,), jnp.float32, -lim1, lim1)
    w2 = jax.random.uniform(k_w2, (DIM_HID, DIM_IN), jnp.float32, -lim2, lim2)
    b2 = jax.random.uniform(k_b2, (DIM_IN,), jnp.float32, -lim2, lim2)

    # nn.LayerNorm default init
    gamma = jnp.ones((DIM_IN,), jnp.float32)
    beta = jnp.zeros((DIM_IN,), jnp.float32)

    # Pure-JAX reference of the same math (eval-mode dropout = identity).
    def ref(x):
        mean = jnp.mean(x, -1, keepdims=True)
        var = jnp.mean((x - mean) ** 2, -1, keepdims=True)
        xn = (x - mean) / jnp.sqrt(var + 1e-6) * gamma + beta
        h = xn @ w1 + b1
        h = h * 0.5 * (1.0 + lax.erf(h / jnp.sqrt(2.0)))
        return h @ w2 + b2 + x

    ref_out = ref(x)

    # Exact f32 MXU path (tight tolerance).
    out_f32 = position_wise_feed_forward(x, w1, b1, w2, b2, gamma, beta,
                                         use_bf16_mxu=False)
    out_f32 = jax.block_until_ready(out_f32)
    assert jnp.allclose(out_f32, ref_out, atol=1e-4, rtol=1e-4)

    # Default bf16 MXU path (f32 accumulation) - looser tolerance vs f32 ref.
    out_bf16 = position_wise_feed_forward(x, w1, b1, w2, b2, gamma, beta)
    out_bf16 = jax.block_until_ready(out_bf16)
    assert jnp.allclose(out_bf16, ref_out, atol=5e-2, rtol=5e-2)

    print("KERNEL_OK")
</pallas_src>

<mosaic_0001>
module attributes {stable_mosaic.version = 11 : i64} {
  func.func @_ffn_kernel_resident(%arg0: i32, %arg1: memref<8x128xf32, #tpu.memory_space<vmem>>, %arg2: memref<128x256xf32, #tpu.memory_space<vmem>>, %arg3: memref<1x256xf32, #tpu.memory_space<vmem>>, %arg4: memref<256x128xf32, #tpu.memory_space<vmem>>, %arg5: memref<1x128xf32, #tpu.memory_space<vmem>>, %arg6: memref<1x128xf32, #tpu.memory_space<vmem>>, %arg7: memref<1x128xf32, #tpu.memory_space<vmem>>, %arg8: memref<8x128xf32, #tpu.memory_space<vmem>>) attributes {dimension_semantics = [#tpu.dimension_semantics<parallel>], iteration_bounds = array<i64: 2>, scalar_prefetch = 0 : i64, scratch_operands = 0 : i64, tpu.core_type = #tpu.core_type<tc>, window_params = [{transform_indices = @transform_0, window_bounds = array<i64: 8, 128>}, {pipeline_mode = #tpu.pipeline_mode<synchronous>, transform_indices = @transform_1, window_bounds = array<i64: 128, 256>}, {pipeline_mode = #tpu.pipeline_mode<synchronous>, transform_indices = @transform_2, window_bounds = array<i64: 1, 256>}, {pipeline_mode = #tpu.pipeline_mode<synchronous>, transform_indices = @transform_3, window_bounds = array<i64: 256, 128>}, {pipeline_mode = #tpu.pipeline_mode<synchronous>, transform_indices = @transform_4, window_bounds = array<i64: 1, 128>}, {pipeline_mode = #tpu.pipeline_mode<synchronous>, transform_indices = @transform_5, window_bounds = array<i64: 1, 128>}, {pipeline_mode = #tpu.pipeline_mode<synchronous>, transform_indices = @transform_6, window_bounds = array<i64: 1, 128>}, {transform_indices = @transform_7, window_bounds = array<i64: 8, 128>}]} {
    %c0 = arith.constant 0 : index
    %c0_0 = arith.constant 0 : index
    %0 = vector.load %arg1[%c0, %c0_0] : memref<8x128xf32, #tpu.memory_space<vmem>>, vector<8x128xf32>
    %cst = arith.constant dense<0.000000e+00> : vector<8xf32>
    %1 = vector.multi_reduction <add>, %0, %cst [1] : vector<8x128xf32> to vector<8xf32>
    %2 = vector.shape_cast %1 : vector<8xf32> to vector<8x1xf32>
    %cst_1 = arith.constant 7.812500e-03 : f32
    %3 = vector.broadcast %cst_1 : f32 to vector<8x1xf32>
    %4 = arith.mulf %2, %3 : vector<8x1xf32>
    %5 = arith.mulf %0, %0 : vector<8x128xf32>
    %cst_2 = arith.constant dense<0.000000e+00> : vector<8xf32>
    %6 = vector.multi_reduction <add>, %5, %cst_2 [1] : vector<8x128xf32> to vector<8xf32>
    %7 = vector.shape_cast %6 : vector<8xf32> to vector<8x1xf32>
    %cst_3 = arith.constant 7.812500e-03 : f32
    %8 = vector.broadcast %cst_3 : f32 to vector<8x1xf32>
    %9 = arith.mulf %7, %8 : vector<8x1xf32>
    %10 = arith.mulf %4, %4 : vector<8x1xf32>
    %11 = arith.subf %9, %10 : vector<8x1xf32>
    %12 = vector.broadcast %4 : vector<8x1xf32> to vector<8x128xf32>
    %13 = arith.subf %0, %12 : vector<8x128xf32>
    %cst_4 = arith.constant 9.99999997E-7 : f32
    %14 = vector.broadcast %cst_4 : f32 to vector<8x1xf32>
    %15 = arith.addf %11, %14 : vector<8x1xf32>
    %16 = math.rsqrt %15 : vector<8x1xf32>
    %17 = vector.broadcast %16 : vector<8x1xf32> to vector<8x128xf32>
    %18 = arith.mulf %13, %17 : vector<8x128xf32>
    %c0_5 = arith.constant 0 : index
    %c0_6 = arith.constant 0 : index
    %19 = vector.load %arg6[%c0_5, %c0_6] : memref<1x128xf32, #tpu.memory_space<vmem>>, vector<1x128xf32>
    %20 = vector.broadcast %19 : vector<1x128xf32> to vector<8x128xf32>
    %21 = arith.mulf %18, %20 : vector<8x128xf32>
    %c0_7 = arith.constant 0 : index
    %c0_8 = arith.constant 0 : index
    %22 = vector.load %arg7[%c0_7, %c0_8] : memref<1x128xf32, #tpu.memory_space<vmem>>, vector<1x128xf32>
    %23 = vector.broadcast %22 : vector<1x128xf32> to vector<8x128xf32>
    %24 = arith.addf %21, %23 : vector<8x128xf32>
    %c0_9 = arith.constant 0 : index
    %c0_10 = arith.constant 0 : index
    %25 = vector.load %arg2[%c0_9, %c0_10] : memref<128x256xf32, #tpu.memory_space<vmem>>, vector<128x256xf32>
    %cst_11 = arith.constant dense<0.000000e+00> : vector<8x256xf32>
    %26 = tpu.matmul %24, %25, %cst_11 {dimension_numbers = #tpu.dot_dimension_numbers<[1], [0], [0], [1], [0, 0, 1, 1], [], []>} : vector<8x128xf32>, vector<128x256xf32>, vector<8x256xf32> -> vector<8x256xf32>
    %c0_12 = arith.constant 0 : index
    %c0_13 = arith.constant 0 : index
    %27 = vector.load %arg3[%c0_12, %c0_13] : memref<1x256xf32, #tpu.memory_space<vmem>>, vector<1x256xf32>
    %28 = vector.broadcast %27 : vector<1x256xf32> to vector<8x256xf32>
    %29 = arith.addf %26, %28 : vector<8x256xf32>
    %cst_14 = arith.constant 5.000000e-01 : f32
    %30 = vector.broadcast %cst_14 : f32 to vector<8x256xf32>
    %31 = arith.mulf %29, %30 : vector<8x256xf32>
    %cst_15 = arith.constant 0.707106769 : f32
    %32 = vector.broadcast %cst_15 : f32 to vector<8x256xf32>
    %33 = arith.mulf %29, %32 : vector<8x256xf32>
    %34 = math.erf %33 : vector<8x256xf32>
    %cst_16 = arith.constant 1.000000e+00 : f32
    %35 = vector.broadcast %cst_16 : f32 to vector<8x256xf32>
    %36 = arith.addf %35, %34 : vector<8x256xf32>
    %37 = arith.mulf %31, %36 : vector<8x256xf32>
    %c0_17 = arith.constant 0 : index
    %c0_18 = arith.constant 0 : index
    %38 = vector.load %arg4[%c0_17, %c0_18] : memref<256x128xf32, #tpu.memory_space<vmem>>, vector<256x128xf32>
    %cst_19 = arith.constant dense<0.000000e+00> : vector<8x128xf32>
    %39 = tpu.matmul %37, %38, %cst_19 {dimension_numbers = #tpu.dot_dimension_numbers<[1], [0], [0], [1], [0, 0, 1, 1], [], []>} : vector<8x256xf32>, vector<256x128xf32>, vector<8x128xf32> -> vector<8x128xf32>
    %c0_20 = arith.constant 0 : index
    %c0_21 = arith.constant 0 : index
    %40 = vector.load %arg5[%c0_20, %c0_21] : memref<1x128xf32, #tpu.memory_space<vmem>>, vector<1x128xf32>
    %41 = vector.broadcast %40 : vector<1x128xf32> to vector<8x128xf32>
    %42 = arith.addf %39, %41 : vector<8x128xf32>
    %43 = arith.addf %42, %0 : vector<8x128xf32>
    %c0_22 = arith.constant 0 : index
    %c0_23 = arith.constant 0 : index
    %44 = vector.load %arg8[%c0_22, %c0_23] : memref<8x128xf32, #tpu.memory_space<vmem>>, vector<8x128xf32>
    tpu.vector_store %arg8[%c0_22, %c0_23], %43 {strides = array<i32>} : memref<8x128xf32, #tpu.memory_space<vmem>>, vector<8x128xf32>,
    return
  }
  func.func @transform_0(%arg0: i32) -> (i32, i32) {
    %c0_i32 = arith.constant 0 : i32
    %c0_i32_0 = arith.constant 0 : i32
    return %arg0, %c0_i32 : i32, i32
  }
  func.func @transform_1(%arg0: i32) -> (i32, i32) {
    %c0_i32 = arith.constant 0 : i32
    %c0_i32_0 = arith.constant 0 : i32
    %c0_i32_1 = arith.constant 0 : i32
    return %c0_i32, %c0_i32_0 : i32, i32
  }
  func.func @transform_2(%arg0: i32) -> (i32, i32) {
    %c0_i32 = arith.constant 0 : i32
    %c0_i32_0 = arith.constant 0 : i32
    %c0_i32_1 = arith.constant 0 : i32
    return %c0_i32, %c0_i32_0 : i32, i32
  }
  func.func @transform_3(%arg0: i32) -> (i32, i32) {
    %c0_i32 = arith.constant 0 : i32
    %c0_i32_0 = arith.constant 0 : i32
    %c0_i32_1 = arith.constant 0 : i32
    return %c0_i32, %c0_i32_0 : i32, i32
  }
  func.func @transform_4(%arg0: i32) -> (i32, i32) {
    %c0_i32 = arith.constant 0 : i32
    %c0_i32_0 = arith.constant 0 : i32
    %c0_i32_1 = arith.constant 0 : i32
    return %c0_i32, %c0_i32_0 : i32, i32
  }
  func.func @transform_5(%arg0: i32) -> (i32, i32) {
    %c0_i32 = arith.constant 0 : i32
    %c0_i32_0 = arith.constant 0 : i32
    %c0_i32_1 = arith.constant 0 : i32
    return %c0_i32, %c0_i32_0 : i32, i32
  }
  func.func @transform_6(%arg0: i32) -> (i32, i32) {
    %c0_i32 = arith.constant 0 : i32
    %c0_i32_0 = arith.constant 0 : i32
    %c0_i32_1 = arith.constant 0 : i32
    return %c0_i32, %c0_i32_0 : i32, i32
  }
  func.func @transform_7(%arg0: i32) -> (i32, i32) {
    %c0_i32 = arith.constant 0 : i32
    %c0_i32_0 = arith.constant 0 : i32
    return %arg0, %c0_i32 : i32, i32
  }
}

</mosaic_0001>

<bundles_post_ra>
// kernel: tpu_custom_call.1
= control target key start
LH: loop header
LB: loop body
LE: loop exit
PB: predicated region body
PF: predicated region fallthrough
CT: control target
= control target key end

     0   :  { %s1307_s0 = inlined_call_operand.hbm [shape: f32[16,128], index: 0, kind: input, shape index: {}]   ;;  %s1308_s1 = inlined_call_operand.hbm [shape: f32[128,256], index: 1, kind: input, shape index: {}]   ;;  %s1309_s2 = inlined_call_operand.hbm [shape: f32[1,256], index: 2, kind: input, shape index: {}]   ;;  %s1310_s3 = inlined_call_operand.hbm [shape: f32[256,128], index: 3, kind: input, shape index: {}]   ;;  %s1311_s4 = inlined_call_operand.vmem [shape: f32[1,128], index: 4, kind: input, shape index: {}]   ;;  %s1312_s5 = inlined_call_operand.vmem [shape: f32[1,128], index: 5, kind: input, shape index: {}]   ;;  %s1313_s6 = inlined_call_operand.vmem [shape: f32[1,128], index: 6, kind: input, shape index: {}]   ;;  %s1314_s7 = inlined_call_operand.hbm [shape: f32[16,128], index: 7, kind: output, shape index: {}]  }
   0x1   :  { %1315 = sst [smem:[#allocation15_spill]] %s1308_s1 }
   0x2   :  { %12 = vsyncpa [#allocation3], 0 }
   0x3   :  { %14 = vsyncpa [#allocation3 + $0x1], 0 }
   0x4   :  { %15 = vsyncpa [#allocation6], 0 }
   0x5   :  { %16 = vsyncpa [#allocation9], 0 }
   0x6   :  { %17 = vsyncpa [#allocation4], 0 }
   0x7   :  { %19 = vsyncpa [#allocation4 + $0x1], 0  ;;  %s1089_s24 = smov 0   ;;  %s1091_s25 = smov 0  }
   0x8   :  { %s1093_s26 = smov 0   ;;  %s1095_s27 = smov 0  }
   0x9 LB: > { %s1316_s1 = sld [smem:[#allocation15_spill]]  ;;  %s1113_s8 = sadd.s32 4294967295, %s1040_s27   ;;  %s1040_s27 = sphi %s1095_s27, %s1327_s27   ;;  %s1036_s26 = sphi %s1093_s26, %s1326_s26   ;;  %s1032_s25 = sphi %s1091_s25, %s1325_s25   ;;  %s1028_s24 = sphi %s1089_s24, %s1324_s24  }
   0xa   : > { %p737_p0 = scmp.ge.s32.totalorder %s1040_s27, 1  ;;  %p46_p1 = scmp.eq.s32.totalorder %s1113_s8, 0 }
   0xb   : > { %p208_p2 = scmp.lt.s32.totalorder %s1040_s27, 3  ;;  %s1042_s10 = smov [#allocation5]  }
   0xc   : > { %s221_s11 = sshll.u32 %s1042_s10, 4  ;;  %s234_s14 = sshll.u32 %s1309_s2, 4  ;;  %s222_s11 = int_to_ptr.vmem [resolvable:$true] %s221_s11  ;;  %s235_s14 = int_to_ptr.hbm [resolvable:$true] %s234_s14 }
   0xd   : > { %p1118_p3 = pnand %p737_p0, %p208_p2  ;;  %s245_s18 = sshll.u32 %s1310_s3, 4  ;;  %s246_s18 = int_to_ptr.hbm [resolvable:$true] %s245_s18 }
   0xe   : > { %s1043_s19 = smov [#allocation7]   ;;  %s1044_s21 = smov 256  }
   0xf   : > { %s219_s30 = sshll.u32 %s1316_s1, 4  ;;  %p772_p4 = pneg %p1118_p3  ;;  %s220_s30 = int_to_ptr.hbm [resolvable:$true] %s219_s30 }
  0x10   : > { %s236_s20 = sshll.u32 %s1043_s19, 4  ;;  %s1045_s22 = smov 16   ;;  %s237_s20 = int_to_ptr.vmem [resolvable:$true] %s236_s20 }
  0x11   : > { %p1130_p6 = pnand %p772_p4, %p46_p1  ;;  %s1046_s23 = smov [#allocation8]  }
  0x12   : > { %s247_s28 = sshll.u32 %s1046_s23, 4  ;;  %s1047_s29 = smov 128   ;;  %s248_s28 = int_to_ptr.vmem [resolvable:$true] %s247_s28 }
  0x13   : > { %775 = dma.hbm_to_vmem [thread:$0]  (!%p1130_p6), %s220_s30, 4096, %s222_s11, [#allocation6], %s1044_s21, %s1044_s21, %s1045_s22  }
  0x14   : > { %778 = dma.hbm_to_vmem [thread:$0]  (!%p1130_p6), %s235_s14, 32, %s237_s20, [#allocation6]  }
  0x15   : > { %s1048_s10 = smov 8   ;;  %s736_s12 = sadd.s32 4294967294, %s1040_s27  }
  0x16   : > { %781 = dma.hbm_to_vmem [thread:$0]  (!%p1130_p6), %s246_s18, 4096, %s248_s28, [#allocation9], %s1047_s29, %s1047_s29, %s1048_s10  }
  0x17   : > { %s1145_s30 = sadd.s32 1, %s1040_s27   ;;  %s32_s11 = sadd.s32 1, %s1036_s26 }
  0x18   : > { %s29_s13 = ssub.s32 %s1040_s27, %s1145_s30  ;;  %p39_p7 = scmp.ne.s32.totalorder %s1036_s26, %s1032_s25 }
  0x19   : > { %p30_p8 = scmp.eq.s32.totalorder %s29_s13, 0  ;;  %p40_p9 = scmp.eq.s32.totalorder %s1040_s27, 0 }
  0x1a   : > { %p45_p10 = scmp.ne.s32.totalorder %s1032_s25, %s1028_s24  ;;  %p195_p11 = scmp.eq.s32.totalorder %s1113_s8, 1 }
  0x1b   : > { %s1157_s14 = scalar_select %p30_p8, %s1036_s26, %s32_s11  }
  0x1c   : > { %p1161_p12 = por %p46_p1, %p45_p10  ;;  %p1165_p13 = por %p195_p11, %p39_p7 }
  0x1d   : > { %p201_p0 = scmp.eq.s32.totalorder %s736_s12, 1  ;;  %p41_p2 = por %p40_p9, %p39_p7 }
  0x1e   : > { %s270_s17 = sand.u32 1, %s1036_s26   ;;  %p793_p6 = scmp.lt.s32.totalorder %s1040_s27, 2 }
  0x1f   : > { %p1170_p4 = por %p201_p0, %p45_p10  ;;  %s742_s19 = sshll.u32 %s270_s17, 3 }
  0x20   : > { %s743_s20 = sshll.u32 %s1040_s27, 3  ;;  %s274_s29 = scalar_lea.vmem [#allocation2], %s742_s19 }
  0x21   : > { %s278_s23 = scalar_lea.hbm %s1307_s0, %s743_s20  ;;  %s282_s10 = sshll.u32 %s274_s29, 4  ;;  %s283_s10 = int_to_ptr.vmem [resolvable:$true] %s282_s10 }
  0x22   : > { %s280_s28 = sshll.u32 %s278_s23, 4  ;;  %p1179_p8 = pnand %p793_p6, %p41_p2  ;;  %s281_s28 = int_to_ptr.hbm [resolvable:$true] %s280_s28 }
  0x23   : > { %s271_s11 = scalar_lea.sflag [#allocation3], %s270_s17  ;;  %s936_s13 = sshra.s32 %s281_s28, 4  ;;  %s937_s13 = int_to_ptr.hbm [resolvable:$true] %s936_s13 }
  0x24   : > { %s938_s1 = scalar_lea.hbm %s937_s13, 8  ;;  %p940_p9 = pneg %p1179_p8 }
  0x25   : > { %p939_p7 = scmp.ne.s32.totalorder %s937_s13, %s938_s1  ;;  %s943_s19 = scalar_lea.hbm %s1307_s0, 16 }
  0x26   : > { %p944_p0 = scmp.lt.s32.totalorder %s937_s13, %s1307_s0  ;;  %p945_p2 = scmp.lt.s32.totalorder %s943_s19, %s938_s1 }
  0x27   : > { %p941_p10 = pnand %p940_p9, %p939_p7 }
  0x28   : > { %p946_p6 = por %p945_p2, %p944_p0 }
  0x29   : > { %p942_p11 = pneg %p941_p10 }
  0x2b   : > { %p947_p5 = pnand %p946_p6, %p942_p11 }
  0x2d   : > { %950 = shalt.err (!%p947_p5)
}
  0x2e   : > { %785 = dma.hbm_to_vmem [thread:$0]  (!%p1179_p8), %s281_s28, 128, %s283_s10, %s271_s11  }
  0x2f   : > { %291 = sbr.rel (%p1118_p3) target bundleno = 532 (0x214), region = 48  ;;  %s1196_s17 = sand.u32 (!%p1118_p3), 1, %s1032_s25  }
  0x30   : > { %s745_s29 = sshll.u32 (!%p1118_p3), %s1196_s17, 3  ;;  %s294_s20 = scalar_lea.sflag (!%p1118_p3), [#allocation3], %s1196_s17 }
  0x31   : > { %s297_s1 = scalar_lea.vmem (!%p1118_p3), [#allocation2], %s745_s29 }
  0x34   : > { %1011 = dma.done.wait (%p1161_p12), %s294_s20, 128  }
  0x35   : > { %1013 = vsyncadd (%p1161_p12), %s294_s20, 4294967168 }
  0x36   : > { %1015 = dma.done.wait (%p46_p1), [#allocation6], 4128  }
  0x37   : > { %1017 = vsyncadd (%p46_p1), [#allocation6], 4294963168 }
  0x38   : > { %1019 = dma.done.wait (%p46_p1), [#allocation9], 4096  }
  0x39   : > { %1021 = vsyncadd (%p46_p1), [#allocation9], 4294963200  ;;  %v1214_v0 = vld [vmem:[%s297_s1] sm:$0xff]  ;;  %v405_v4 = vld [vmem:[#allocation5 + $0xe0] sm:$0xff]  ;;  %s753_s12 = sshll.u32 %s1113_s8, 3  ;;  %s343_s23 = scalar_lea.vmem [#allocation10], %s745_s29 }
  0x3a   : > { %345 = vadd.xlane.f32.xlu0 %v1214_v0  ;;  %v348_v1 = vmul.f32 %v1214_v0, %v1214_v0  ;;  %v407_v2 = vld [vmem:[#allocation5 + $0xf0] sm:$0xff]  ;;  %v408_v3 = vld [vmem:[#allocation5 + $0xf8] sm:$0xff]  ;;  %v406_v5 = vld [vmem:[#allocation5 + $0xe8] sm:$0xff]  ;;  %s632_s22 = scalar_lea.hbm %s1314_s7, %s753_s12  ;;  %s634_s20 = sshll.u32 %s343_s23, 4  ;;  %s635_s20 = int_to_ptr.vmem [resolvable:$true] %s634_s20 }
  0x3b   : > { %415 = vmatpush.msra.mxu0 %v407_v2  ;;  %435 = vmatpush.msra.mxu1 %v408_v3  ;;  %v403_v6 = vld [vmem:[#allocation5 + $0xd0] sm:$0xff]  ;;  %v404_v7 = vld [vmem:[#allocation5 + $0xd8] sm:$0xff]  ;;  %v401_v8 = vld [vmem:[#allocation5 + $0xc0] sm:$0xff]  ;;  %s636_s1 = sshll.u32 %s632_s22, 4  ;;  %s622_s8 = scalar_lea.sflag [#allocation4], %s1196_s17  ;;  %s637_s1 = int_to_ptr.hbm [resolvable:$true] %s636_s1 }
  0x3c   : > { %v402_v9 = vld [vmem:[#allocation5 + $0xc8] sm:$0xff]  ;;  %v399_v10 = vld [vmem:[#allocation5 + $0xb0] sm:$0xff]  ;;  %v400_v11 = vld [vmem:[#allocation5 + $0xb8] sm:$0xff]  ;;  %s980_s9 = sshra.s32 %s637_s1, 4  ;;  %s986_s29 = scalar_lea.hbm %s1314_s7, 16  ;;  %s981_s9 = int_to_ptr.hbm [resolvable:$true] %s980_s9 }
  0x3d   : > { %416 = vmatpush.msra.mxu0 %v405_v4  ;;  %436 = vmatpush.msra.mxu1 %v406_v5  ;;  %v397_v12 = vld [vmem:[#allocation5 + $0xa0] sm:$0xff]  ;;  %v398_v13 = vld [vmem:[#allocation5 + $0xa8] sm:$0xff]  ;;  %v395_v14 = vld [vmem:[#allocation5 + $0x90] sm:$0xff]  ;;  %s982_s15 = scalar_lea.hbm %s981_s9, 8  ;;  %p987_p12 = scmp.lt.s32.totalorder %s981_s9, %s1314_s7 }
  0x3e   : > { %v396_v15 = vld [vmem:[#allocation5 + $0x98] sm:$0xff]  ;;  %v393_v16 = vld [vmem:[#allocation5 + $0x80] sm:$0xff]  ;;  %v394_v17 = vld [vmem:[#allocation5 + $0x88] sm:$0xff]  ;;  %p983_p1 = scmp.ne.s32.totalorder %s981_s9, %s982_s15  ;;  %p988_p8 = scmp.lt.s32.totalorder %s986_s29, %s982_s15 }
  0x3f   : > { %417 = vmatpush.msra.mxu0 %v403_v6  ;;  %437 = vmatpush.msra.mxu1 %v404_v7  ;;  %v391_v18 = vld [vmem:[#allocation5 + $0x70] sm:$0xff]  ;;  %v392_v19 = vld [vmem:[#allocation5 + $0x78] sm:$0xff]  ;;  %v389_v20 = vld [vmem:[#allocation5 + $0x60] sm:$0xff] }
  0x40   : > { %v390_v21 = vld [vmem:[#allocation5 + $0x68] sm:$0xff]  ;;  %v387_v22 = vld [vmem:[#allocation5 + $0x50] sm:$0xff]  ;;  %v388_v23 = vld [vmem:[#allocation5 + $0x58] sm:$0xff]  ;;  %p984_p3 = pnand %p983_p1, %p1165_p13  ;;  %p989_p7 = por %p988_p8, %p987_p12 }
  0x41   : > { %418 = vmatpush.msra.mxu0 %v401_v8  ;;  %438 = vmatpush.msra.mxu1 %v402_v9  ;;  %v385_v24 = vld [vmem:[#allocation5 + $0x40] sm:$0xff]  ;;  %v386_v25 = vld [vmem:[#allocation5 + $0x48] sm:$0xff]  ;;  %v383_v26 = vld [vmem:[#allocation5 + $0x30] sm:$0xff] }
  0x42   : > { %349 = vadd.xlane.f32.xlu0 %v348_v1  ;;  %v384_v27 = vld [vmem:[#allocation5 + $0x38] sm:$0xff]  ;;  %v381_v28 = vld [vmem:[#allocation5 + $0x20] sm:$0xff]  ;;  %v382_v29 = vld [vmem:[#allocation5 + $0x28] sm:$0xff]  ;;  %p985_p5 = pneg %p984_p3 }
  0x43   : > { %419 = vmatpush.msra.mxu0 %v399_v10  ;;  %439 = vmatpush.msra.mxu1 %v400_v11  ;;  %v379_v31 = vld [vmem:[#allocation5 + $0x10] sm:$0xff]  ;;  %v380_v32 = vld [vmem:[#allocation5 + $0x18] sm:$0xff]  ;;  %v377_v33 = vld [vmem:[#allocation5] sm:$0xff] }
  0x44   : > { %v378_v34 = vld [vmem:[#allocation5 + $0x8] sm:$0xff]  ;;  %v837_v48 = vld [vmem:[%s1312_s5] ss:$0 sm:$0xff]  ;;  %v558_v54 = vld [vmem:[#allocation8 + $0x78] sm:$0xff]  ;;  %p990_p9 = pnand %p989_p7, %p985_p5 }
  0x45   : > { %420 = vmatpush.msra.mxu0 %v397_v12  ;;  %440 = vmatpush.msra.mxu1 %v398_v13  ;;  %v838_v51 = vld [vmem:[%s1313_s6] ss:$0 sm:$0xff]  ;;  %v574_v55 = vld [vmem:[#allocation8 + $0xf8] sm:$0xff]  ;;  %v557_v56 = vld [vmem:[#allocation8 + $0x70] sm:$0xff] }
  0x46   : > { %579 = vmatpush.msra.mxu2 %v558_v54  ;;  %599 = vmatpush.msra.mxu3 %v574_v55  ;;  %v573_v57 = vld [vmem:[#allocation8 + $0xf0] sm:$0xff]  ;;  %v409_v58 = vld [vmem:[#allocation7] sm:$0x3]  ;;  %v556_v59 = vld [vmem:[#allocation8 + $0x68] sm:$0xff] }
  0x47   : > { %421 = vmatpush.msra.mxu0 %v395_v14  ;;  %441 = vmatpush.msra.mxu1 %v396_v15  ;;  %v572_v60 = vld [vmem:[#allocation8 + $0xe8] sm:$0xff]  ;;  %v555_v61 = vld [vmem:[#allocation8 + $0x60] sm:$0xff]  ;;  %v411_v63 = vperm.slane %v409_v58, 0  ;;  %v412_v1 = vperm.slane %v409_v58, 1  ;;  %v554_v2 = vld [vmem:[#allocation8 + $0x58] sm:$0xff] }
  0x48   : > { %580 = vmatpush.msra.mxu2 %v557_v56  ;;  %600 = vmatpush.msra.mxu3 %v573_v57  ;;  %v571_v62 = vld [vmem:[#allocation8 + $0xe0] sm:$0xff]  ;;  %v570_v3 = vld [vmem:[#allocation8 + $0xd8] sm:$0xff]  ;;  %v553_v4 = vld [vmem:[#allocation8 + $0x50] sm:$0xff] }
  0x49   : > { %422 = vmatpush.msra.mxu0 %v393_v16  ;;  %442 = vmatpush.msra.mxu1 %v394_v17  ;;  %v569_v5 = vld [vmem:[#allocation8 + $0xd0] sm:$0xff]  ;;  %v552_v8 = vld [vmem:[#allocation8 + $0x48] sm:$0xff]  ;;  %v551_v12 = vld [vmem:[#allocation8 + $0x40] sm:$0xff] }
  0x4a   : > { %581 = vmatpush.msra.mxu2 %v556_v59  ;;  %601 = vmatpush.msra.mxu3 %v572_v60  ;;  %v568_v9 = vld [vmem:[#allocation8 + $0xc8] sm:$0xff]  ;;  %v567_v13 = vld [vmem:[#allocation8 + $0xc0] sm:$0xff]  ;;  %v550_v16 = vld [vmem:[#allocation8 + $0x38] sm:$0xff] }
  0x4b   : > { %423 = vmatpush.msra.mxu0 %v391_v18  ;;  %443 = vmatpush.msra.mxu1 %v392_v19  ;;  %v566_v17 = vld [vmem:[#allocation8 + $0xb8] sm:$0xff] }
  0x4c   : > { %582 = vmatpush.msra.mxu2 %v555_v61  ;;  %602 = vmatpush.msra.mxu3 %v571_v62 }
  0x4d   : > { %424 = vmatpush.msra.mxu0 %v389_v20  ;;  %444 = vmatpush.msra.mxu1 %v390_v21  ;;  %v549_v20 = vld [vmem:[#allocation8 + $0x30] sm:$0xff] }
  0x4e   : > { %583 = vmatpush.msra.mxu2 %v554_v2  ;;  %603 = vmatpush.msra.mxu3 %v570_v3  ;;  %v565_v21 = vld [vmem:[#allocation8 + $0xb0] sm:$0xff] }
  0x4f   : > { %425 = vmatpush.msra.mxu0 %v387_v22  ;;  %445 = vmatpush.msra.mxu1 %v388_v23 }
  0x50   : > { %584 = vmatpush.msra.mxu2 %v553_v4  ;;  %604 = vmatpush.msra.mxu3 %v569_v5 }
  0x51   : > { %426 = vmatpush.msra.mxu0 %v385_v24  ;;  %446 = vmatpush.msra.mxu1 %v386_v25  ;;  %v548_v24 = vld [vmem:[#allocation8 + $0x28] sm:$0xff] }
  0x52   : > { %585 = vmatpush.msra.mxu2 %v552_v8  ;;  %605 = vmatpush.msra.mxu3 %v568_v9  ;;  %v564_v25 = vld [vmem:[#allocation8 + $0xa8] sm:$0xff] }
  0x53   : > { %427 = vmatpush.msra.mxu0 %v383_v26  ;;  %447 = vmatpush.msra.mxu1 %v384_v27 }
  0x54   : > { %586 = vmatpush.msra.mxu2 %v551_v12  ;;  %606 = vmatpush.msra.mxu3 %v567_v13 }
  0x55   : > { %428 = vmatpush.msra.mxu0 %v381_v28  ;;  %448 = vmatpush.msra.mxu1 %v382_v29  ;;  %v547_v29 = vld [vmem:[#allocation8 + $0x20] sm:$0xff] }
  0x56   : > { %587 = vmatpush.msra.mxu2 %v550_v16  ;;  %607 = vmatpush.msra.mxu3 %v566_v17 }
  0x57   : > { %429 = vmatpush.msra.mxu0 %v379_v31  ;;  %449 = vmatpush.msra.mxu1 %v380_v32 }
  0x58   : > { %588 = vmatpush.msra.mxu2 %v549_v20  ;;  %608 = vmatpush.msra.mxu3 %v565_v21 }
  0x59   : > { %430 = vmatpush.msra.mxu0 %v377_v33  ;;  %450 = vmatpush.msra.mxu1 %v378_v34 }
  0x5a   : > { %589 = vmatpush.msra.mxu2 %v548_v24  ;;  %609 = vmatpush.msra.mxu3 %v564_v25 }
  0x5c   : > { %590 = vmatpush.msra.mxu2 %v547_v29 }
  0xad   : > { %v346_v30 = vpop.xlane.xlu0 %345 }
  0xae   : > { %v347_v35 = vmul.f32 0.0078125, %v346_v30  ;;  %v563_v30 = vld [vmem:[#allocation8 + $0xa0] sm:$0xff] }
  0xaf   : > { %610 = vmatpush.msra.mxu3 %v563_v30 }
  0xb0   : > { %v352_v37 = vmul.f32 %v347_v35, %v347_v35  ;;  %v354_v47 = vsub.f32 %v1214_v0, %v347_v35  ;;  %v546_v35 = vld [vmem:[#allocation8 + $0x18] sm:$0xff] }
  0xb1   : > { %591 = vmatpush.msra.mxu2 %v546_v35 }
  0xb5   : > { %v350_v36 = vpop.xlane.xlu0 %349 }
  0xb6   : > { %v351_v38 = vmul.f32 0.0078125, %v350_v36  ;;  %v562_v36 = vld [vmem:[#allocation8 + $0x98] sm:$0xff] }
  0xb7   : > { %611 = vmatpush.msra.mxu3 %v562_v36 }
  0xb8   : > { %v353_v39 = vsub.f32 %v351_v38, %v352_v37 }
  0xba   : > { %v355_v40 = vadd.f32 1e-06, %v353_v39 }
  0xbc   : > { %840 = vrsqrt.f32 %v355_v40  ;;  %vm362_vm1 = vweird.f32 %v355_v40 }
  0xc2   : > { %v841_v41 = vpop.eup %840 }
  0xc3   : > { %v357_v42 = vmul.f32 %v841_v41, %v355_v40  ;;  %vm363_vm0 = vweird.f32 %v841_v41 }
  0xc4   : > { %vm364_vm2 = vmor %vm362_vm1, %vm363_vm0 }
  0xc5   : > { %v358_v43 = vmul.f32 %v841_v41, %v357_v42  ;;  %v561_v42 = vld [vmem:[#allocation8 + $0x90] sm:$0xff] }
  0xc6   : > { %612 = vmatpush.msra.mxu3 %v561_v42 }
  0xc7   : > { %v359_v44 = vmul.f32 0.5, %v358_v43 }
  0xc9   : > { %v360_v45 = vsub.f32 1.5, %v359_v44 }
  0xcb   : > { %v361_v46 = vmul.f32 %v841_v41, %v360_v45 }
  0xcd   : > { %v365_v49 = vsel %vm364_vm2, %v841_v41, %v361_v46  ;;  %v545_v41 = vld [vmem:[#allocation8 + $0x10] sm:$0xff]  ;;  %v544_v46 = vld [vmem:[#allocation8 + $0x8] sm:$0xff] }
  0xce   : > { %v366_v50 = vmul.f32 %v365_v49, %v354_v47  ;;  %v560_v47 = vld [vmem:[#allocation8 + $0x88] sm:$0xff]  ;;  %592 = vmatpush.msra.mxu2 %v545_v41 }
  0xcf   : > { %613 = vmatpush.msra.mxu3 %v560_v47 }
  0xd0   : > { %v371_v52 = vmul.f32 %v837_v48, %v366_v50  ;;  %593 = vmatpush.msra.mxu2 %v544_v46 }
  0xd2   : > { %v376_v53 = vadd.f32 %v838_v51, %v371_v52  ;;  %v543_v51 = vld [vmem:[#allocation8] sm:$0xff] }
  0xd3   : > { %v559_v52 = vld [vmem:[#allocation8 + $0x80] sm:$0xff]  ;;  %594 = vmatpush.msra.mxu2 %v543_v51 }
  0xd4   : > { %431 = vmatmul.f32.vlgmr.msra.gmra.mxu0 %v376_v53  ;;  %451 = vmatmul.f32.vlgmr.msra.gmra.mxu1 %v376_v53 }
  0xd5   : > { %614 = vmatpush.msra.mxu3 %v559_v52 }
 0x151   : > { %v432_v6 = vpop.f32.mrf.mxu0  ;;  %v452_v7 = vpop.f32.mrf.mxu1 }
 0x152   : > { %v1226_v10 = vadd.f32 %v432_v6, %v411_v63  ;;  %v1228_v11 = vadd.f32 %v452_v7, %v412_v1 }
 0x154   : > { %v1231_v14 = vmul.f32 0.70710677, %v1226_v10  ;;  %v1234_v15 = vmul.f32 0.70710677, %v1228_v11 }
 0x156   : > { %v459_v18 = vmul.f32 %v1231_v14, %v1231_v14  ;;  %v499_v19 = vmul.f32 %v1234_v15, %v1234_v15 }
 0x158   : > { %v1240_v22 = vmin.f32 %v459_v18, 16.0  ;;  %v1242_v23 = vmin.f32 %v499_v19, 16.0 }
 0x15a   : > { %v461_v26 = vmul.f32 2.1237322e-06, %v1240_v22  ;;  %v501_v27 = vmul.f32 2.1237322e-06, %v1242_v23  ;;  %v472_v28 = vmul.f32 3.8918573e-05, %v1240_v22 }
 0x15b   : > { %v512_v31 = vmul.f32 3.8918573e-05, %v1242_v23 }
 0x15c   : > { %v462_v32 = vadd.f32 0.00028619796, %v461_v26  ;;  %v502_v33 = vadd.f32 0.00028619796, %v501_v27  ;;  %v473_v34 = vadd.f32 0.001143296, %v472_v28 }
 0x15d   : > { %v513_v37 = vadd.f32 0.001143296, %v512_v31 }
 0x15e   : > { %v463_v38 = vmul.f32 %v462_v32, %v1240_v22  ;;  %v503_v39 = vmul.f32 %v502_v33, %v1242_v23  ;;  %v474_v40 = vmul.f32 %v473_v34, %v1240_v22 }
 0x15f   : > { %v514_v43 = vmul.f32 %v513_v37, %v1242_v23 }
 0x160   : > { %v464_v44 = vadd.f32 0.0036580483, %v463_v38  ;;  %v475_v45 = vadd.f32 0.014752088, %v474_v40  ;;  %v504_v49 = vadd.f32 0.0036580483, %v503_v39 }
 0x161   : > { %v515_v48 = vadd.f32 0.014752088, %v514_v43  ;;  %v455_v43 = vmul.f32 0.5, %v1226_v10 }
 0x162   : > { %v476_v50 = vmul.f32 %v475_v45, %v1240_v22  ;;  %v465_v54 = vmul.f32 %v464_v44, %v1240_v22  ;;  %v505_v57 = vmul.f32 %v504_v49, %v1242_v23 }
 0x163   : > { %v516_v53 = vmul.f32 %v515_v48, %v1242_v23 }
 0x164   : > { %v477_v55 = vadd.f32 0.112945676, %v476_v50  ;;  %v466_v60 = vadd.f32 0.05243302, %v465_v54  ;;  %v506_v63 = vadd.f32 0.05243302, %v505_v57 }
 0x165   : > { %v517_v56 = vadd.f32 0.112945676, %v516_v53 }
 0x166   : > { %v478_v58 = vmul.f32 %v477_v55, %v1240_v22  ;;  %v467_v3 = vmul.f32 %v466_v60, %v1240_v22  ;;  %v507_v6 = vmul.f32 %v506_v63, %v1242_v23 }
 0x167   : > { %v518_v59 = vmul.f32 %v517_v56, %v1242_v23 }
 0x168   : > { %v479_v61 = vadd.f32 0.4994258, %v478_v58  ;;  %v468_v7 = vadd.f32 0.18741608, %v467_v3  ;;  %v508_v8 = vadd.f32 0.18741608, %v507_v6 }
 0x169   : > { %v519_v62 = vadd.f32 0.4994258, %v518_v59 }
 0x16a   : > { %v480_v1 = vmul.f32 %v479_v61, %v1240_v22  ;;  %v469_v12 = vmul.f32 %v468_v7, %v1240_v22  ;;  %v509_v17 = vmul.f32 %v508_v8, %v1242_v23 }
 0x16b   : > { %v520_v2 = vmul.f32 %v519_v62, %v1242_v23 }
 0x16c   : > { %v481_v4 = vadd.f32 1.0, %v480_v1  ;;  %v470_v20 = vadd.f32 1.1283791, %v469_v12  ;;  %v510_v28 = vadd.f32 1.1283791, %v509_v17 }
 0x16d   : > { %v521_v5 = vadd.f32 1.0, %v520_v2 }
 0x16e   : > { %842 = vrcp.f32 %v481_v4  ;;  %v493_v21 = vand.u32 2147483648, %v481_v4  ;;  %v491_v26 = vand.u32 2147483647, %v481_v4  ;;  %vm487_vm5 = vweird.f32 %v481_v4 }
 0x16f   : > { %844 = vrcp.f32 %v521_v5  ;;  %v533_v27 = vand.u32 2147483648, %v521_v5  ;;  %v531_v30 = vand.u32 2147483647, %v521_v5  ;;  %vm527_vm7 = vweird.f32 %v521_v5 }
 0x170   : > { %v494_v22 = vor.u32 1.1754944e-38, %v493_v21  ;;  %v471_v23 = vmul.f32 %v470_v20, %v1231_v14  ;;  %vm492_vm8 = vcmp.eq.f32.partialorder %v491_v26, 8.507059e+37  ;;  %v511_v35 = vmul.f32 %v510_v28, %v1234_v15  ;;  %v839_v15 = vld [vmem:[%s1311_s4] ss:$0 sm:$0xff] }
 0x171   : > { %v534_v34 = vor.u32 1.1754944e-38, %v533_v27  ;;  %vm532_vm10 = vcmp.eq.f32.partialorder %v531_v30, 8.507059e+37  ;;  %v456_v14 = vmul.f32 0.5, %v1228_v11 }
 0x174   : > { %v843_v9 = vpop.eup %842 }
 0x175   : > { %v845_v13 = vpop.eup %844  ;;  %v483_v16 = vmul.f32 %v843_v9, %v481_v4  ;;  %vm488_vm3 = vweird.f32 %v843_v9 }
 0x176   : > { %v523_v18 = vmul.f32 %v845_v13, %v521_v5  ;;  %vm528_vm4 = vweird.f32 %v845_v13  ;;  %vm489_vm6 = vmor %vm487_vm5, %vm488_vm3 }
 0x177   : > { %v484_v19 = vsub.f32 1.0, %v483_v16  ;;  %vm529_vm9 = vmor %vm527_vm7, %vm528_vm4 }
 0x178   : > { %v524_v24 = vsub.f32 1.0, %v523_v18 }
 0x179   : > { %v485_v25 = vmul.f32 %v843_v9, %v484_v19 }
 0x17a   : > { %v525_v29 = vmul.f32 %v845_v13, %v524_v24 }
 0x17b   : > { %v486_v31 = vadd.f32 %v843_v9, %v485_v25 }
 0x17c   : > { %v526_v32 = vadd.f32 %v845_v13, %v525_v29 }
 0x17d   : > { %v490_v33 = vsel %vm489_vm6, %v843_v9, %v486_v31 }
 0x17e   : > { %v495_v36 = vsel %vm492_vm8, %v494_v22, %v490_v33  ;;  %v530_v37 = vsel %vm529_vm9, %v845_v13, %v526_v32 }
 0x17f   : > { %v496_v38 = vmul.f32 %v495_v36, %v471_v23  ;;  %v535_v39 = vsel %vm532_vm10, %v534_v34, %v530_v37 }
 0x180   : > { %v536_v40 = vmul.f32 %v535_v39, %v511_v35 }
 0x181   : > { %v750_v41 = vclamps-f32 %v496_v38, 1.0 }
 0x182   : > { %v751_v42 = vclamps-f32 %v536_v40, 1.0 }
 0x183   : > { %v539_v44 = vadd.f32 1.0, %v750_v41 }
 0x184   : > { %v540_v45 = vadd.f32 1.0, %v751_v42 }
 0x185   : > { %v541_v46 = vmul.f32 %v539_v44, %v455_v43 }
 0x186   : > { %v542_v47 = vmul.f32 %v540_v45, %v456_v14 }
 0x187   : > { %595 = vmatmul.f32.vlgmr.msra.gmra.mxu2 %v541_v46 }
 0x188   : > { %615 = vmatmul.f32.vlgmr.msra.gmra.mxu3 %v542_v47 }
 0x20a   : > { %v596_v48 = vpop.f32.mrf.mxu2 }
 0x20b   : > { %v597_v10 = vadd.f32 %v839_v15, %v596_v48  ;;  %v616_v49 = vpop.f32.mrf.mxu3 }
 0x20d   : > { %v617_v11 = vadd.f32 %v616_v49, %v597_v10 }
 0x20f   : > { %v619_v50 = vadd.f32 %v617_v11, %v1214_v0 }
 0x211   : > { %620 = vst [vmem:[%s343_s23] sm:$0xff] %v619_v50 }
 0x212   : > { %993 = shalt.err (!%p990_p9)
}
 0x213   : > { %770 = dma.vmem_to_hbm [thread:$0]  (%p1165_p13), %s635_s20, 128, %s637_s1, %s622_s8  }
 0x214 PF: > { %s648_s17 = sand.u32 1, %s1028_s24   ;;  %p1323_p10 = scmp.ge.s32.totalorder %s1040_s27, 2 }
 0x215   : > { %s649_s13 = scalar_lea.sflag [#allocation4], %s648_s17 }
 0x216   : > { %p787_p11 = pnand %p1323_p10, %p1170_p4 }
 0x218   : > { %p788_p0 = pneg %p787_p11 }
 0x21a   : > { %1023 = dma.done.wait (%p788_p0), %s649_s13, 128  }
 0x21b   : > { %1025 = vsyncadd (%p788_p0), %s649_s13, 4294967168  ;;  %p22_p2 = scmp.ge.s32.totalorder %s1145_s30, 4   ;;  %s1324_s24 = smov %s1032_s25 }
 0x21c   : > { %s1325_s25 = smov %s1036_s26  ;;  %s1326_s26 = smov %s1157_s14 }
 0x21d   : > { %s1327_s27 = smov %s1145_s30  ;;  %24 = sbr.rel (!%p22_p2) target bundleno = 9 (0x9), region = 105 }
 0x222   :  { %655 = vsyncpa [#allocation3], 1 }
 0x223   :  { %657 = vsyncpa [#allocation3 + $0x1], 1 }
 0x224   :  { %658 = vsyncpa [#allocation6], 1 }
 0x225   :  { %659 = vsyncpa [#allocation9], 1 }
 0x226   :  { %660 = vsyncpa [#allocation4], 1 }
 0x227   :  { %662 = vsyncpa [#allocation4 + $0x1], 1 }

</bundles_post_ra>
